<compile_context>
chip_gen: v7x
topology: tpu7x:2x2x1
jax: 0.10.0
libtpu: 0.0.40
codegen_flags: <defaults>
</compile_context>

<pallas_src>
import functools

import jax
import jax.numpy as jnp
from jax.experimental import pallas as pl
from jax.experimental.pallas import tpu as pltpu

_LANE = 128
_ROW = 16          # bf16 activations pack 16 rows per vreg sublane group


def _round_up(n, m):
    return ((n + m - 1) // m) * m


def _cdiv(a, b):
    return (a + b - 1) // b


# ---------------------------------------------------------------------------
# Trace-time hardware introspection (pure Python; all shapes stay static).
# ---------------------------------------------------------------------------
def _device_kind():
    try:
        return jax.devices()[0].device_kind.lower()
    except Exception:
        return ""


def _vmem_capacity_bytes():
    kind = _device_kind()
    if "v7" in kind:
        return 64 << 20                      # per-TensorCore on v7x
    if "v6" in kind or "v5" in kind:
        return 128 << 20
    try:
        return int(pltpu.get_tpu_info().vmem_capacity_bytes)
    except Exception:
        return 64 << 20                      # conservative default


def _use_bf16_epilogue():
    # v5e and older have no bf16 VPU; keep the f32 bias-add/ReLU path there.
    kind = _device_kind()
    return ("v6" in kind) or ("v7" in kind)


def _feature_pad(dim):
    # v6e/v7x MXUs are 2x256x256: pad feature dims >128 to multiples of 256 so
    # no half-utilized trailing MXU slab. Keep 128 on older chips / tiny dims.
    kind = _device_kind()
    base = 256 if (("v6" in kind or "v7" in kind) and dim > _LANE) else _LANE
    return _round_up(dim, base)


# ---------------------------------------------------------------------------
# One-time parameter preparation (hoisted out of the per-call path).
# ---------------------------------------------------------------------------
def prepare_params(params):
    """Zero-pad weights/biases to lane-dense shapes and cast weights to bf16.

    params: dict with w1..w5 stored [in_features, out_features] and b1..b5
            stored [1, out_features], all float32.
    Zero padding is mathematically inert: padded weight rows/cols and bias
    lanes are zero, ReLU(0)=0, and padded rows of the next weight are zero.
    """
    in_d = params["w1"].shape[0]
    hid_d = params["w1"].shape[1]
    out_d = params["w5"].shape[1]
    in_p, hid_p, out_p = _feature_pad(in_d), _feature_pad(hid_d), _feature_pad(out_d)
    w_dims = [(in_p, hid_p), (hid_p, hid_p), (hid_p, hid_p),
              (hid_p, hid_p), (hid_p, out_p)]
    prepared = {}
    for i, (r, c) in enumerate(w_dims, start=1):
        w = params[f"w{i}"]
        b = params[f"b{i}"]
        prepared[f"w{i}"] = jnp.pad(
            w, ((0, r - w.shape[0]), (0, c - w.shape[1]))).astype(jnp.bfloat16)
        prepared[f"b{i}"] = jnp.pad(
            b, ((0, 0), (0, c - b.shape[1]))).astype(jnp.float32)
    return prepared


# ---------------------------------------------------------------------------
# Fused kernel: all five layers on one batch tile, weights resident in VMEM.
# ---------------------------------------------------------------------------
def _ffn_fused_kernel(x_ref,
                      w1_ref, b1_ref, w2_ref, b2_ref, w3_ref, b3_ref,
                      w4_ref, b4_ref, w5_ref, b5_ref,
                      o_ref, *, bf16_epilogue):
    """(Linear -> ReLU) x4 -> Linear. bf16 MXU operands, f32 accumulation."""

    def layer(h, w_ref, b_ref, relu):
        y = jnp.dot(h, w_ref[...], preferred_element_type=jnp.float32)
        if relu:
            if bf16_epilogue:
                y = y.astype(jnp.bfloat16) + b_ref[...].astype(jnp.bfloat16)
            else:
                y = y + b_ref[...]
            y = jnp.maximum(y, 0.0)
            return y.astype(jnp.bfloat16)
        return y + b_ref[...]                    # final layer: f32 bias add

    h = x_ref[...]                               # already bf16
    h = layer(h, w1_ref, b1_ref, True)
    h = layer(h, w2_ref, b2_ref, True)
    h = layer(h, w3_ref, b3_ref, True)
    h = layer(h, w4_ref, b4_ref, True)
    o_ref[...] = layer(h, w5_ref, b5_ref, False).astype(o_ref.dtype)


# ---------------------------------------------------------------------------
# Fallback: per-layer K-tiled matmul (for hidden dims whose weights do not
# fit resident in VMEM).
# ---------------------------------------------------------------------------
def _linear_kernel(x_ref, w_ref, b_ref, o_ref, acc_ref, *, relu):
    @pl.when(pl.program_id(2) == 0)
    def _():
        acc_ref[...] = jnp.zeros_like(acc_ref)

    acc_ref[...] += jnp.dot(x_ref[...], w_ref[...],
                            preferred_element_type=jnp.float32)

    @pl.when(pl.program_id(2) == pl.num_programs(2) - 1)
    def _():
        y = acc_ref[...] + b_ref[...]
        if relu:
            y = jnp.maximum(y, 0.0)
        o_ref[...] = y.astype(o_ref.dtype)


def _tiled_linear(x, w, b, *, relu, out_dtype, tm, vmem_limit):
    M, K = x.shape
    _, N = w.shape

    def pick(dim, cap=512):
        t = cap
        while dim % t:
            t //= 2
        return max(t, _LANE)

    tk, tn = pick(K), pick(N)
    grid = (M // tm, N // tn, K // tk)
    return pl.pallas_call(
        functools.partial(_linear_kernel, relu=relu),
        out_shape=jax.ShapeDtypeStruct((M, N), out_dtype),
        grid_spec=pltpu.PrefetchScalarGridSpec(
            num_scalar_prefetch=0,
            grid=grid,
            in_specs=[pl.BlockSpec((tm, tk), lambda i, j, k: (i, k)),
                      pl.BlockSpec((tk, tn), lambda i, j, k: (k, j)),
                      pl.BlockSpec((1, tn), lambda i, j, k: (0, j))],
            out_specs=pl.BlockSpec((tm, tn), lambda i, j, k: (i, j)),
            scratch_shapes=[pltpu.VMEM((tm, tn), jnp.float32)]),
        compiler_params=pltpu.CompilerParams(
            dimension_semantics=("parallel", "parallel", "arbitrary"),
            vmem_limit_bytes=vmem_limit),
    )(x, w, b)


# ---------------------------------------------------------------------------
# Forward wrapper.
# ---------------------------------------------------------------------------
@functools.partial(jax.jit,
                   static_argnames=("output_dim", "block_b", "force_fallback"))
def custom_ffn_v2(x, prepared, *, output_dim, block_b=512, force_fallback=False):
    """CustomFFNv2 forward.

    x: [B, input_dim] float32.
    prepared: output of prepare_params() (padded bf16 weights, f32 biases).
    """
    B, input_dim = x.shape
    in_p = prepared["w1"].shape[0]
    hid_p = prepared["w1"].shape[1]
    out_p = prepared["w5"].shape[1]
    assert input_dim <= in_p

    bf16_epilogue = _use_bf16_epilogue()
    vmem_phys = _vmem_capacity_bytes()
    vmem_limit = max(vmem_phys - (16 << 20), 32 << 20)   # headroom for Mosaic
    budget = vmem_limit - (8 << 20)

    # ---- batch tile selection (all Python ints; shapes static under jit) ---
    bb = max(_ROW, min(_round_up(block_b, _ROW), _round_up(B, _ROW)))
    # Let the batch grid axis split across v7x's two TensorCores for large B.
    # TODO(synk): use pltpu.CORE_PARALLEL / core_map for guaranteed per-core
    # sharding instead of relying on "parallel".
    if B >= 2 * _ROW:
        bb = min(bb, _round_up(_cdiv(B, 2), _ROW))

    def vmem_estimate(tile_b):
        w_bytes = 2 * (in_p * hid_p + 3 * hid_p * hid_p + hid_p * out_p)  # bf16, single-buffered
        b_bytes = 4 * (4 * hid_p + out_p)                                 # f32, single-buffered
        io_bytes = 2 * (2 * tile_b * in_p + 4 * tile_b * out_p)           # 2x-buffered x(bf16)/out(f32)
        act_bytes = 16 * tile_b * hid_p                                   # intermediates headroom
        return w_bytes + b_bytes + io_bytes + act_bytes

    while bb > _ROW and vmem_estimate(bb) > budget:
        bb = _round_up(bb // 2, _ROW)

    use_fused = (not force_fallback) and vmem_estimate(_ROW) <= budget
    if not use_fused:
        bb = min(bb, 256)                      # fallback batch tile

    B_full = _round_up(B, bb)
    xp = jnp.pad(x.astype(jnp.bfloat16),
                 ((0, B_full - B), (0, in_p - input_dim)))

    if use_fused:
        def resident(shape):
            # Constant block index -> fetched once across the batch loop;
            # single-buffered so the weights occupy one VMEM copy, not two.
            return pl.BlockSpec(shape, lambda i: (0, 0),
                                pipeline_mode=pl.Buffered(1))

        in_specs = [pl.BlockSpec((bb, in_p), lambda i: (i, 0))]   # x tile
        for l in range(1, 6):
            in_specs.append(resident(prepared[f"w{l}"].shape))
            in_specs.append(resident(prepared[f"b{l}"].shape))
        out_spec = pl.BlockSpec((bb, out_p), lambda i: (i, 0))    # lane-dense

        out_padded = pl.pallas_call(
            functools.partial(_ffn_fused_kernel, bf16_epilogue=bf16_epilogue),
            out_shape=jax.ShapeDtypeStruct((B_full, out_p), x.dtype),
            grid_spec=pltpu.PrefetchScalarGridSpec(
                num_scalar_prefetch=0,
                grid=(B_full // bb,),
                in_specs=in_specs,
                out_specs=out_spec,
            ),
            compiler_params=pltpu.CompilerParams(
                dimension_semantics=("parallel",),
                vmem_limit_bytes=vmem_limit,
            ),
        )(xp,
          prepared["w1"], prepared["b1"],
          prepared["w2"], prepared["b2"],
          prepared["w3"], prepared["b3"],
          prepared["w4"], prepared["b4"],
          prepared["w5"], prepared["b5"])
    else:
        # Large hidden_dim: weights cannot be resident; run layer-by-layer
        # tiled matmuls with a K grid axis and an f32 VMEM accumulator.
        tm = bb
        h = xp
        for l in range(1, 5):
            h = _tiled_linear(h, prepared[f"w{l}"], prepared[f"b{l}"],
                              relu=True, out_dtype=jnp.bfloat16,
                              tm=tm, vmem_limit=vmem_limit)
        out_padded = _tiled_linear(h, prepared["w5"], prepared["b5"],
                                   relu=False, out_dtype=x.dtype,
                                   tm=tm, vmem_limit=vmem_limit)

    return out_padded[:B, :output_dim]


# ---------------------------------------------------------------------------
# Init + references.
# ---------------------------------------------------------------------------
def init_params(key, input_dim, hidden_dim, output_dim):
    """PyTorch nn.Linear-style uniform init; weights stored [in, out]."""
    dims = [(input_dim, hidden_dim),
            (hidden_dim, hidden_dim),
            (hidden_dim, hidden_dim),
            (hidden_dim, hidden_dim),
            (hidden_dim, output_dim)]
    params = {}
    for idx, (fan_in, fan_out) in enumerate(dims, start=1):
        key, kw, kb = jax.random.split(key, 3)
        bound = 1.0 / jnp.sqrt(fan_in)
        params[f"w{idx}"] = jax.random.uniform(
            kw, (fan_in, fan_out), jnp.float32, -bound, bound)
        params[f"b{idx}"] = jax.random.uniform(
            kb, (1, fan_out), jnp.float32, -bound, bound)
    return params


def reference_ffn_f32(x, params):
    h = x
    for idx in range(1, 5):
        h = jnp.maximum(h @ params[f"w{idx}"] + params[f"b{idx}"], 0.0)
    return h @ params["w5"] + params["b5"]


def reference_ffn_bf16(x, params, bf16_epilogue=False):
    """Emulates the kernel numerics: bf16 dot operands, f32 MXU accumulation,
    and (optionally) the bf16 bias-add/ReLU epilogue used on v6e/v7x."""
    h = x
    for idx in range(1, 5):
        z = jnp.dot(h.astype(jnp.bfloat16),
                    params[f"w{idx}"].astype(jnp.bfloat16),
                    preferred_element_type=jnp.float32)
        if bf16_epilogue:
            z = z.astype(jnp.bfloat16) + params[f"b{idx}"].astype(jnp.bfloat16)
        else:
            z = z + params[f"b{idx}"]
        h = jnp.maximum(z, 0.0)
    return jnp.dot(h.astype(jnp.bfloat16),
                   params["w5"].astype(jnp.bfloat16),
                   preferred_element_type=jnp.float32) + params["b5"]


if __name__ == "__main__":
    key = jax.random.PRNGKey(0)
    B, input_dim, hidden_dim, output_dim = 8, 32, 64, 16

    key, kx = jax.random.split(key)
    x = jax.random.normal(kx, (B, input_dim), jnp.float32)
    params = init_params(key, input_dim, hidden_dim, output_dim)
    prepared = prepare_params(params)

    # Fused (resident-weights) path.
    out = custom_ffn_v2(x, prepared, output_dim=output_dim)
    out = jax.block_until_ready(out)
    assert out.shape == (B, output_dim)

    ref_bf16 = reference_ffn_bf16(x, params, bf16_epilogue=_use_bf16_epilogue())
    ref_f32 = reference_ffn_f32(x, params)
    assert jnp.allclose(out, ref_bf16, atol=1e-2, rtol=1e-2), \
        "mismatch vs bf16-emulated reference"
    assert jnp.allclose(out, ref_f32, atol=1e-1, rtol=1e-1), \
        "mismatch vs f32 reference"

    # Exercise the K-tiled fallback path (used for very large hidden_dim).
    out_fb = custom_ffn_v2(x, prepared, output_dim=output_dim,
                           force_fallback=True)
    out_fb = jax.block_until_ready(out_fb)
    ref_fb = reference_ffn_bf16(x, params, bf16_epilogue=False)
    assert out_fb.shape == (B, output_dim)
    assert jnp.allclose(out_fb, ref_fb, atol=1e-2, rtol=1e-2), \
        "fallback path mismatch vs bf16-emulated reference"

    print("KERNEL_OK")
</pallas_src>

<mosaic_0001>
module attributes {stable_mosaic.version = 11 : i64} {
  func.func @_ffn_fused_kernel(%arg0: i32, %arg1: memref<16x128xbf16, #tpu.memory_space<vmem>>, %arg2: memref<128x128xbf16, #tpu.memory_space<vmem>>, %arg3: memref<1x128xf32, #tpu.memory_space<vmem>>, %arg4: memref<128x128xbf16, #tpu.memory_space<vmem>>, %arg5: memref<1x128xf32, #tpu.memory_space<vmem>>, %arg6: memref<128x128xbf16, #tpu.memory_space<vmem>>, %arg7: memref<1x128xf32, #tpu.memory_space<vmem>>, %arg8: memref<128x128xbf16, #tpu.memory_space<vmem>>, %arg9: memref<1x128xf32, #tpu.memory_space<vmem>>, %arg10: memref<128x128xbf16, #tpu.memory_space<vmem>>, %arg11: memref<1x128xf32, #tpu.memory_space<vmem>>, %arg12: memref<16x128xf32, #tpu.memory_space<vmem>>) attributes {dimension_semantics = [#tpu.dimension_semantics<parallel>], iteration_bounds = array<i64: 1>, scalar_prefetch = 0 : i64, scratch_operands = 0 : i64, tpu.core_type = #tpu.core_type<tc>, window_params = [{transform_indices = @transform_0, window_bounds = array<i64: 16, 128>}, {pipeline_mode = #tpu.pipeline_mode<synchronous>, transform_indices = @transform_1, window_bounds = array<i64: 128, 128>}, {pipeline_mode = #tpu.pipeline_mode<synchronous>, transform_indices = @transform_2, window_bounds = array<i64: 1, 128>}, {pipeline_mode = #tpu.pipeline_mode<synchronous>, transform_indices = @transform_3, window_bounds = array<i64: 128, 128>}, {pipeline_mode = #tpu.pipeline_mode<synchronous>, transform_indices = @transform_4, window_bounds = array<i64: 1, 128>}, {pipeline_mode = #tpu.pipeline_mode<synchronous>, transform_indices = @transform_5, window_bounds = array<i64: 128, 128>}, {pipeline_mode = #tpu.pipeline_mode<synchronous>, transform_indices = @transform_6, window_bounds = array<i64: 1, 128>}, {pipeline_mode = #tpu.pipeline_mode<synchronous>, transform_indices = @transform_7, window_bounds = array<i64: 128, 128>}, {pipeline_mode = #tpu.pipeline_mode<synchronous>, transform_indices = @transform_8, window_bounds = array<i64: 1, 128>}, {pipeline_mode = #tpu.pipeline_mode<synchronous>, transform_indices = @transform_9, window_bounds = array<i64: 128, 128>}, {pipeline_mode = #tpu.pipeline_mode<synchronous>, transform_indices = @transform_10, window_bounds = array<i64: 1, 128>}, {transform_indices = @transform_11, window_bounds = array<i64: 16, 128>}]} {
    %c0 = arith.constant 0 : index
    %c0_0 = arith.constant 0 : index
    %0 = vector.load %arg1[%c0, %c0_0] : memref<16x128xbf16, #tpu.memory_space<vmem>>, vector<16x128xbf16>
    %c0_1 = arith.constant 0 : index
    %c0_2 = arith.constant 0 : index
    %1 = vector.load %arg2[%c0_1, %c0_2] : memref<128x128xbf16, #tpu.memory_space<vmem>>, vector<128x128xbf16>
    %cst = arith.constant dense<0.000000e+00> : vector<16x128xf32>
    %2 = tpu.matmul %0, %1, %cst {dimension_numbers = #tpu.dot_dimension_numbers<[1], [0], [0], [1], [0, 0, 1, 1], [], []>} : vector<16x128xbf16>, vector<128x128xbf16>, vector<16x128xf32> -> vector<16x128xf32>
    %c0_3 = arith.constant 0 : index
    %c0_4 = arith.constant 0 : index
    %3 = vector.load %arg3[%c0_3, %c0_4] : memref<1x128xf32, #tpu.memory_space<vmem>>, vector<1x128xf32>
    %4 = vector.broadcast %3 : vector<1x128xf32> to vector<16x128xf32>
    %5 = arith.addf %2, %4 : vector<16x128xf32>
    %cst_5 = arith.constant 0.000000e+00 : f32
    %6 = vector.broadcast %cst_5 : f32 to vector<16x128xf32>
    %7 = arith.maximumf %5, %6 : vector<16x128xf32>
    %8 = arith.truncf %7 : vector<16x128xf32> to vector<16x128xbf16>
    %c0_6 = arith.constant 0 : index
    %c0_7 = arith.constant 0 : index
    %9 = vector.load %arg4[%c0_6, %c0_7] : memref<128x128xbf16, #tpu.memory_space<vmem>>, vector<128x128xbf16>
    %cst_8 = arith.constant dense<0.000000e+00> : vector<16x128xf32>
    %10 = tpu.matmul %8, %9, %cst_8 {dimension_numbers = #tpu.dot_dimension_numbers<[1], [0], [0], [1], [0, 0, 1, 1], [], []>} : vector<16x128xbf16>, vector<128x128xbf16>, vector<16x128xf32> -> vector<16x128xf32>
    %c0_9 = arith.constant 0 : index
    %c0_10 = arith.constant 0 : index
    %11 = vector.load %arg5[%c0_9, %c0_10] : memref<1x128xf32, #tpu.memory_space<vmem>>, vector<1x128xf32>
    %12 = vector.broadcast %11 : vector<1x128xf32> to vector<16x128xf32>
    %13 = arith.addf %10, %12 : vector<16x128xf32>
    %cst_11 = arith.constant 0.000000e+00 : f32
    %14 = vector.broadcast %cst_11 : f32 to vector<16x128xf32>
    %15 = arith.maximumf %13, %14 : vector<16x128xf32>
    %16 = arith.truncf %15 : vector<16x128xf32> to vector<16x128xbf16>
    %c0_12 = arith.constant 0 : index
    %c0_13 = arith.constant 0 : index
    %17 = vector.load %arg6[%c0_12, %c0_13] : memref<128x128xbf16, #tpu.memory_space<vmem>>, vector<128x128xbf16>
    %cst_14 = arith.constant dense<0.000000e+00> : vector<16x128xf32>
    %18 = tpu.matmul %16, %17, %cst_14 {dimension_numbers = #tpu.dot_dimension_numbers<[1], [0], [0], [1], [0, 0, 1, 1], [], []>} : vector<16x128xbf16>, vector<128x128xbf16>, vector<16x128xf32> -> vector<16x128xf32>
    %c0_15 = arith.constant 0 : index
    %c0_16 = arith.constant 0 : index
    %19 = vector.load %arg7[%c0_15, %c0_16] : memref<1x128xf32, #tpu.memory_space<vmem>>, vector<1x128xf32>
    %20 = vector.broadcast %19 : vector<1x128xf32> to vector<16x128xf32>
    %21 = arith.addf %18, %20 : vector<16x128xf32>
    %cst_17 = arith.constant 0.000000e+00 : f32
    %22 = vector.broadcast %cst_17 : f32 to vector<16x128xf32>
    %23 = arith.maximumf %21, %22 : vector<16x128xf32>
    %24 = arith.truncf %23 : vector<16x128xf32> to vector<16x128xbf16>
    %c0_18 = arith.constant 0 : index
    %c0_19 = arith.constant 0 : index
    %25 = vector.load %arg8[%c0_18, %c0_19] : memref<128x128xbf16, #tpu.memory_space<vmem>>, vector<128x128xbf16>
    %cst_20 = arith.constant dense<0.000000e+00> : vector<16x128xf32>
    %26 = tpu.matmul %24, %25, %cst_20 {dimension_numbers = #tpu.dot_dimension_numbers<[1], [0], [0], [1], [0, 0, 1, 1], [], []>} : vector<16x128xbf16>, vector<128x128xbf16>, vector<16x128xf32> -> vector<16x128xf32>
    %c0_21 = arith.constant 0 : index
    %c0_22 = arith.constant 0 : index
    %27 = vector.load %arg9[%c0_21, %c0_22] : memref<1x128xf32, #tpu.memory_space<vmem>>, vector<1x128xf32>
    %28 = vector.broadcast %27 : vector<1x128xf32> to vector<16x128xf32>
    %29 = arith.addf %26, %28 : vector<16x128xf32>
    %cst_23 = arith.constant 0.000000e+00 : f32
    %30 = vector.broadcast %cst_23 : f32 to vector<16x128xf32>
    %31 = arith.maximumf %29, %30 : vector<16x128xf32>
    %32 = arith.truncf %31 : vector<16x128xf32> to vector<16x128xbf16>
    %c0_24 = arith.constant 0 : index
    %c0_25 = arith.constant 0 : index
    %33 = vector.load %arg10[%c0_24, %c0_25] : memref<128x128xbf16, #tpu.memory_space<vmem>>, vector<128x128xbf16>
    %cst_26 = arith.constant dense<0.000000e+00> : vector<16x128xf32>
    %34 = tpu.matmul %32, %33, %cst_26 {dimension_numbers = #tpu.dot_dimension_numbers<[1], [0], [0], [1], [0, 0, 1, 1], [], []>} : vector<16x128xbf16>, vector<128x128xbf16>, vector<16x128xf32> -> vector<16x128xf32>
    %c0_27 = arith.constant 0 : index
    %c0_28 = arith.constant 0 : index
    %35 = vector.load %arg11[%c0_27, %c0_28] : memref<1x128xf32, #tpu.memory_space<vmem>>, vector<1x128xf32>
    %36 = vector.broadcast %35 : vector<1x128xf32> to vector<16x128xf32>
    %37 = arith.addf %34, %36 : vector<16x128xf32>
    %c0_29 = arith.constant 0 : index
    %c0_30 = arith.constant 0 : index
    %38 = vector.load %arg12[%c0_29, %c0_30] : memref<16x128xf32, #tpu.memory_space<vmem>>, vector<16x128xf32>
    tpu.vector_store %arg12[%c0_29, %c0_30], %37 {strides = array<i32>} : memref<16x128xf32, #tpu.memory_space<vmem>>, vector<16x128xf32>,
    return
  }
  func.func @transform_0(%arg0: i32) -> (i32, i32) {
    %c0_i32 = arith.constant 0 : i32
    %c0_i32_0 = arith.constant 0 : i32
    return %arg0, %c0_i32 : i32, i32
  }
  func.func @transform_1(%arg0: i32) -> (i32, i32) {
    %c0_i32 = arith.constant 0 : i32
    %c0_i32_0 = arith.constant 0 : i32
    %c0_i32_1 = arith.constant 0 : i32
    return %c0_i32, %c0_i32_0 : i32, i32
  }
  func.func @transform_2(%arg0: i32) -> (i32, i32) {
    %c0_i32 = arith.constant 0 : i32
    %c0_i32_0 = arith.constant 0 : i32
    %c0_i32_1 = arith.constant 0 : i32
    return %c0_i32, %c0_i32_0 : i32, i32
  }
  func.func @transform_3(%arg0: i32) -> (i32, i32) {
    %c0_i32 = arith.constant 0 : i32
    %c0_i32_0 = arith.constant 0 : i32
    %c0_i32_1 = arith.constant 0 : i32
    return %c0_i32, %c0_i32_0 : i32, i32
  }
  func.func @transform_4(%arg0: i32) -> (i32, i32) {
    %c0_i32 = arith.constant 0 : i32
    %c0_i32_0 = arith.constant 0 : i32
    %c0_i32_1 = arith.constant 0 : i32
    return %c0_i32, %c0_i32_0 : i32, i32
  }
  func.func @transform_5(%arg0: i32) -> (i32, i32) {
    %c0_i32 = arith.constant 0 : i32
    %c0_i32_0 = arith.constant 0 : i32
    %c0_i32_1 = arith.constant 0 : i32
    return %c0_i32, %c0_i32_0 : i32, i32
  }
  func.func @transform_6(%arg0: i32) -> (i32, i32) {
    %c0_i32 = arith.constant 0 : i32
    %c0_i32_0 = arith.constant 0 : i32
    %c0_i32_1 = arith.constant 0 : i32
    return %c0_i32, %c0_i32_0 : i32, i32
  }
  func.func @transform_7(%arg0: i32) -> (i32, i32) {
    %c0_i32 = arith.constant 0 : i32
    %c0_i32_0 = arith.constant 0 : i32
    %c0_i32_1 = arith.constant 0 : i32
    return %c0_i32, %c0_i32_0 : i32, i32
  }
  func.func @transform_8(%arg0: i32) -> (i32, i32) {
    %c0_i32 = arith.constant 0 : i32
    %c0_i32_0 = arith.constant 0 : i32
    %c0_i32_1 = arith.constant 0 : i32
    return %c0_i32, %c0_i32_0 : i32, i32
  }
  func.func @transform_9(%arg0: i32) -> (i32, i32) {
    %c0_i32 = arith.constant 0 : i32
    %c0_i32_0 = arith.constant 0 : i32
    %c0_i32_1 = arith.constant 0 : i32
    return %c0_i32, %c0_i32_0 : i32, i32
  }
  func.func @transform_10(%arg0: i32) -> (i32, i32) {
    %c0_i32 = arith.constant 0 : i32
    %c0_i32_0 = arith.constant 0 : i32
    %c0_i32_1 = arith.constant 0 : i32
    return %c0_i32, %c0_i32_0 : i32, i32
  }
  func.func @transform_11(%arg0: i32) -> (i32, i32) {
    %c0_i32 = arith.constant 0 : i32
    %c0_i32_0 = arith.constant 0 : i32
    return %arg0, %c0_i32 : i32, i32
  }
}

</mosaic_0001>

<bundles_post_ra>
// kernel: custom_ffn_v2.1
= control target key start
LH: loop header
LB: loop body
LE: loop exit
PB: predicated region body
PF: predicated region fallthrough
CT: control target
= control target key end

     0   :  { %16 = vsyncpa [#allocation3], 0  ;;  %s1285_s0 = inlined_call_operand.vmem [shape: bf16[16,128], index: 0, kind: input, shape index: {}]   ;;  %s1286_s1 = inlined_call_operand.hbm [shape: bf16[128,128], index: 1, kind: input, shape index: {}]   ;;  %s1287_s2 = inlined_call_operand.vmem [shape: f32[1,128], index: 2, kind: input, shape index: {}]   ;;  %s1288_s3 = inlined_call_operand.hbm [shape: bf16[128,128], index: 3, kind: input, shape index: {}]   ;;  %s1289_s4 = inlined_call_operand.vmem [shape: f32[1,128], index: 4, kind: input, shape index: {}]   ;;  %s1290_s5 = inlined_call_operand.hbm [shape: bf16[128,128], index: 5, kind: input, shape index: {}]   ;;  %s1291_s6 = inlined_call_operand.vmem [shape: f32[1,128], index: 6, kind: input, shape index: {}]   ;;  %s1292_s7 = inlined_call_operand.hbm [shape: bf16[128,128], index: 7, kind: input, shape index: {}]   ;;  %s1293_s8 = inlined_call_operand.vmem [shape: f32[1,128], index: 8, kind: input, shape index: {}]   ;;  %s1294_s9 = inlined_call_operand.hbm [shape: bf16[128,128], index: 9, kind: input, shape index: {}]   ;;  %s1295_s10 = inlined_call_operand.vmem [shape: f32[1,128], index: 10, kind: input, shape index: {}]   ;;  %s1296_s11 = inlined_call_operand.vmem [shape: f32[16,128], index: 11, kind: output, shape index: {}]  }
   0x1   :  { %17 = vsyncpa [#allocation5], 0 }
   0x2   :  { %18 = vsyncpa [#allocation8], 0  ;;  %s1053_s17 = smov [#allocation4]   ;;  %s1054_s19 = smov [#allocation7]  }
   0x3   :  { %s40_s18 = sshll.u32 %s1053_s17, 4  ;;  %s68_s20 = sshll.u32 %s1054_s19, 4  ;;  %s41_s18 = int_to_ptr.vmem [resolvable:$true] %s40_s18  ;;  %s1122_s20 = int_to_ptr.vmem [resolvable:$true] %s68_s20 }
   0x4   :  { %s937_s23 = scalar_lea.hbm %s1288_s3, 1024 }
   0x5   :  { %p938_p0 = scmp.ne.s32.totalorder %s1288_s3, %s937_s23  ;;  %p941_p1 = scmp.lt.u32.totalorder %s937_s23, %s1288_s3 }
   0x7   :  { %p943_p2 = pnand %p941_p1, %p938_p0 }
   0x9   :  { %946 = shalt.err (!%p943_p2)
}
   0xa   :  { %s947_s28 = scalar_lea.vmem %s41_s18, 1024  ;;  %p952_p4 = scmp.lt.s32.totalorder %s41_s18, %s41_s18 }
   0xb   :  { %p948_p3 = scmp.ne.s32.totalorder %s41_s18, %s947_s28  ;;  %p953_p5 = scmp.lt.s32.totalorder %s947_s28, %s947_s28 }
   0xd   :  { %p954_p6 = por %p953_p5, %p952_p4 }
   0xf   :  { %p955_p7 = pnand %p954_p6, %p948_p3 }
  0x11   :  { %958 = shalt.err (!%p955_p7)
}
  0x12   :  { %s1055_s29 = smov 64   ;;  %s1056_s30 = smov 4  }
  0x13   :  { %46 = dma.hbm_to_vmem [thread:$0]  %s1288_s3, 1024, %s41_s18, [#allocation5], %s1055_s29, %s1055_s29, %s1056_s30  }
  0x14   :  { %s959_s16 = scalar_lea.hbm %s1292_s7, 1024 }
  0x15   :  { %p960_p8 = scmp.ne.s32.totalorder %s1292_s7, %s959_s16  ;;  %p963_p9 = scmp.lt.u32.totalorder %s959_s16, %s1292_s7 }
  0x17   :  { %p965_p10 = pnand %p963_p9, %p960_p8 }
  0x19   :  { %968 = shalt.err (!%p965_p10)
}
  0x1a   :  { %s969_s23 = scalar_lea.vmem %s1122_s20, 1024  ;;  %p974_p12 = scmp.lt.s32.totalorder %s1122_s20, %s1122_s20 }
  0x1b   :  { %p970_p11 = scmp.ne.s32.totalorder %s1122_s20, %s969_s23  ;;  %p975_p13 = scmp.lt.s32.totalorder %s969_s23, %s969_s23 }
  0x1d   :  { %p976_p0 = por %p975_p13, %p974_p12 }
  0x1f   :  { %p977_p1 = pnand %p976_p0, %p970_p11 }
  0x21   :  { %980 = shalt.err (!%p977_p1)
}
  0x22   :  { %74 = dma.hbm_to_vmem [thread:$0]  %s1292_s7, 1024, %s1122_s20, [#allocation8], %s1055_s29, %s1055_s29, %s1056_s30  }
  0x23   :  { %s1057_s24 = smov [#allocation2]   ;;  %s1058_s26 = smov [#allocation6]  }
  0x24   :  { %s26_s25 = sshll.u32 %s1057_s24, 4  ;;  %s54_s27 = sshll.u32 %s1058_s26, 4  ;;  %s27_s25 = int_to_ptr.vmem [resolvable:$true] %s26_s25  ;;  %s1159_s27 = int_to_ptr.vmem [resolvable:$true] %s54_s27 }
  0x25   :  { %s981_s13 = scalar_lea.hbm %s1286_s1, 1024 }
  0x26   :  { %p982_p2 = scmp.ne.s32.totalorder %s1286_s1, %s981_s13  ;;  %p985_p3 = scmp.lt.u32.totalorder %s981_s13, %s1286_s1 }
  0x28   :  { %p987_p4 = pnand %p985_p3, %p982_p2 }
  0x2a   :  { %990 = shalt.err (!%p987_p4)
}
  0x2b   :  { %s991_s7 = scalar_lea.vmem %s27_s25, 1024  ;;  %p996_p6 = scmp.lt.s32.totalorder %s27_s25, %s27_s25 }
  0x2c   :  { %p992_p5 = scmp.ne.s32.totalorder %s27_s25, %s991_s7  ;;  %p997_p7 = scmp.lt.s32.totalorder %s991_s7, %s991_s7 }
  0x2e   :  { %p998_p8 = por %p997_p7, %p996_p6 }
  0x30   :  { %p999_p9 = pnand %p998_p8, %p992_p5 }
  0x32   :  { %1002 = shalt.err (!%p999_p9)
}
  0x33   :  { %32 = dma.hbm_to_vmem [thread:$0]  %s1286_s1, 1024, %s27_s25, [#allocation3], %s1055_s29, %s1055_s29, %s1056_s30  }
  0x34   :  { %s1003_s23 = scalar_lea.hbm %s1290_s5, 1024 }
  0x35   :  { %p1004_p10 = scmp.ne.s32.totalorder %s1290_s5, %s1003_s23  ;;  %p1007_p11 = scmp.lt.u32.totalorder %s1003_s23, %s1290_s5 }
  0x37   :  { %p1009_p12 = pnand %p1007_p11, %p1004_p10 }
  0x39   :  { %1012 = shalt.err (!%p1009_p12)
}
  0x3a   :  { %s1013_s28 = scalar_lea.vmem %s1159_s27, 1024  ;;  %p1018_p0 = scmp.lt.s32.totalorder %s1159_s27, %s1159_s27 }
  0x3b   :  { %p1014_p13 = scmp.ne.s32.totalorder %s1159_s27, %s1013_s28  ;;  %p1019_p1 = scmp.lt.s32.totalorder %s1013_s28, %s1013_s28 }
  0x3d   :  { %p1020_p2 = por %p1019_p1, %p1018_p0 }
  0x3f   :  { %p1021_p3 = pnand %p1020_p2, %p1014_p13 }
  0x41   :  { %1024 = shalt.err (!%p1021_p3)
}
  0x42   :  { %60 = dma.hbm_to_vmem [thread:$0]  %s1290_s5, 1024, %s1159_s27, [#allocation5], %s1055_s29, %s1055_s29, %s1056_s30  }
  0x43   :  { %s1059_s12 = smov [#allocation9]   ;;  %s1025_s16 = scalar_lea.hbm %s1294_s9, 1024 }
  0x44   :  { %s82_s13 = sshll.u32 %s1059_s12, 4  ;;  %p1026_p4 = scmp.ne.s32.totalorder %s1294_s9, %s1025_s16  ;;  %s83_s13 = int_to_ptr.vmem [resolvable:$true] %s82_s13 }
  0x45   :  { %p1029_p5 = scmp.lt.u32.totalorder %s1025_s16, %s1294_s9 }
  0x47   :  { %p1031_p6 = pnand %p1029_p5, %p1026_p4 }
  0x49   :  { %1034 = shalt.err (!%p1031_p6)
}
  0x4a   :  { %s1035_s21 = scalar_lea.vmem %s83_s13, 1024  ;;  %p1040_p8 = scmp.lt.s32.totalorder %s83_s13, %s83_s13 }
  0x4b   :  { %p1036_p7 = scmp.ne.s32.totalorder %s83_s13, %s1035_s21  ;;  %p1041_p9 = scmp.lt.s32.totalorder %s1035_s21, %s1035_s21 }
  0x4d   :  { %p1042_p10 = por %p1041_p9, %p1040_p8 }
  0x4f   :  { %p1043_p11 = pnand %p1042_p10, %p1036_p7 }
  0x51   :  { %1046 = shalt.err (!%p1043_p11)
}
  0x52   :  { %88 = dma.hbm_to_vmem [thread:$0]  %s1294_s9, 1024, %s83_s13, [#allocation8], %s1055_s29, %s1055_s29, %s1056_s30  }
  0x53   :  { %1047 = dma.done.wait [#allocation3], 1024  }
  0x54   :  { %1048 = vsyncadd [#allocation3], 4294966272 }
  0x55   :  { %1049 = dma.done.wait [#allocation5], 2048  }
  0x56   :  { %1050 = vsyncadd [#allocation5], 4294965248 }
  0x57   :  { %1051 = dma.done.wait [#allocation8], 2048  }
  0x58   :  { %1052 = vsyncadd [#allocation8], 4294965248  ;;  %v1060_v0 = vmov 0.0   ;;  %vm1061_vm0 = vmmov 0   ;;  %v896_v1 = vld [vmem:[#allocation2] sm:$0xff]   ;;  %v897_v2 = vld [vmem:[#allocation2 + $0x8] sm:$0xff]  }
  0x59   :  { %787 = vmatprep.subr.bf16.mxu0 %v1060_v0  ;;  %803 = vmatprep.mubr.msk.bf16.mxu0 %vm1061_vm0, %v1060_v0  ;;  %v898_v3 = vld [vmem:[#allocation2 + $0x10] sm:$0xff]   ;;  %v905_v4 = vld [vmem:[#allocation4] sm:$0xff]   ;;  %v899_v5 = vld [vmem:[#allocation2 + $0x18] sm:$0xff]  }
  0x5a   :  { %807 = vmatprep.subr.bf16.mxu1 %v1060_v0  ;;  %823 = vmatprep.mubr.msk.bf16.mxu1 %vm1061_vm0, %v1060_v0  ;;  %v906_v6 = vld [vmem:[#allocation4 + $0x8] sm:$0xff]   ;;  %v900_v7 = vld [vmem:[#allocation2 + $0x20] sm:$0xff]   ;;  %v907_v8 = vld [vmem:[#allocation4 + $0x10] sm:$0xff]  }
  0x5b   :  { %788 = vmatpush3.bf16.msra.mxu0 %v896_v1  ;;  %808 = vmatpush3.bf16.msra.mxu1 %v905_v4  ;;  %v901_v9 = vld [vmem:[#allocation2 + $0x28] sm:$0xff]   ;;  %v908_v10 = vld [vmem:[#allocation4 + $0x18] sm:$0xff]   ;;  %v902_v11 = vld [vmem:[#allocation2 + $0x30] sm:$0xff]  }
  0x5c   :  { %789 = vmatprep.subr.bf16.mxu0 %v1060_v0  ;;  %809 = vmatprep.subr.bf16.mxu1 %v1060_v0  ;;  %v909_v12 = vld [vmem:[#allocation4 + $0x20] sm:$0xff]   ;;  %v903_v13 = vld [vmem:[#allocation2 + $0x38] sm:$0xff]   ;;  %v910_v14 = vld [vmem:[#allocation4 + $0x28] sm:$0xff]  }
  0x5d   :  { %v904_v15 = vld [vmem:[%s1285_s0] sm:$0xff]   ;;  %v911_v16 = vld [vmem:[#allocation4 + $0x30] sm:$0xff]   ;;  %v912_v17 = vld [vmem:[#allocation4 + $0x38] sm:$0xff]  }
  0x5e   :  { %v913_v18 = vld [vmem:[#allocation6] sm:$0xff]   ;;  %v914_v19 = vld [vmem:[#allocation6 + $0x8] sm:$0xff]   ;;  %v915_v20 = vld [vmem:[#allocation6 + $0x10] sm:$0xff]  }
  0x5f   :  { %790 = vmatpush3.bf16.msra.mxu0 %v897_v2  ;;  %810 = vmatpush3.bf16.msra.mxu1 %v906_v6  ;;  %v916_v21 = vld [vmem:[#allocation6 + $0x18] sm:$0xff]   ;;  %v917_v22 = vld [vmem:[#allocation6 + $0x20] sm:$0xff]   ;;  %v918_v23 = vld [vmem:[#allocation6 + $0x28] sm:$0xff]  }
  0x60   :  { %791 = vmatprep.subr.bf16.mxu0 %v1060_v0  ;;  %811 = vmatprep.subr.bf16.mxu1 %v1060_v0  ;;  %v696_v24 = vld [vmem:[%s1287_s2] ss:$0 sm:$0xff]  ;;  %v919_v34 = vld [vmem:[#allocation6 + $0x30] sm:$0xff]   ;;  %v920_v35 = vld [vmem:[#allocation6 + $0x38] sm:$0xff]  }
  0x61   :  { %v921_v36 = vld [vmem:[#allocation7] sm:$0xff]   ;;  %v922_v37 = vld [vmem:[#allocation7 + $0x8] sm:$0xff]   ;;  %v923_v38 = vld [vmem:[#allocation7 + $0x10] sm:$0xff]  }
  0x62   :  { %v924_v39 = vld [vmem:[#allocation7 + $0x18] sm:$0xff]   ;;  %v925_v40 = vld [vmem:[#allocation7 + $0x20] sm:$0xff]   ;;  %v926_v41 = vld [vmem:[#allocation7 + $0x28] sm:$0xff]  }
  0x63   :  { %792 = vmatpush3.bf16.msra.mxu0 %v898_v3  ;;  %812 = vmatpush3.bf16.msra.mxu1 %v907_v8  ;;  %v706_v42 = vld [vmem:[%s1289_s4] ss:$0 sm:$0xff]  ;;  %v927_v52 = vld [vmem:[#allocation7 + $0x30] sm:$0xff]   ;;  %v928_v53 = vld [vmem:[#allocation7 + $0x38] sm:$0xff]  }
  0x64   :  { %793 = vmatprep.subr.bf16.mxu0 %v1060_v0  ;;  %813 = vmatprep.subr.bf16.mxu1 %v1060_v0  ;;  %v929_v54 = vld [vmem:[#allocation9] sm:$0xff]   ;;  %v930_v55 = vld [vmem:[#allocation9 + $0x8] sm:$0xff]   ;;  %v931_v56 = vld [vmem:[#allocation9 + $0x10] sm:$0xff]  }
  0x65   :  { %v932_v57 = vld [vmem:[#allocation9 + $0x18] sm:$0xff]   ;;  %v933_v58 = vld [vmem:[#allocation9 + $0x20] sm:$0xff]   ;;  %v934_v59 = vld [vmem:[#allocation9 + $0x28] sm:$0xff]  }
  0x66   :  { %v715_v60 = vld [vmem:[%s1291_s6] ss:$0 sm:$0xff]  ;;  %v936_v8 = vld [vmem:[#allocation9 + $0x38] sm:$0xff]  }
  0x67   :  { %794 = vmatpush3.bf16.msra.mxu0 %v899_v5  ;;  %814 = vmatpush3.bf16.msra.mxu1 %v908_v10 }
  0x68   :  { %795 = vmatprep.subr.bf16.mxu0 %v1060_v0  ;;  %815 = vmatprep.subr.bf16.mxu1 %v1060_v0 }
  0x6b   :  { %796 = vmatpush3.bf16.msra.mxu0 %v900_v7  ;;  %816 = vmatpush3.bf16.msra.mxu1 %v909_v12  ;;  %v935_v7 = vld [vmem:[#allocation9 + $0x30] sm:$0xff]  }
  0x6c   :  { %797 = vmatprep.subr.bf16.mxu0 %v1060_v0  ;;  %817 = vmatprep.subr.bf16.mxu1 %v1060_v0 }
  0x6f   :  { %798 = vmatpush3.bf16.msra.mxu0 %v901_v9  ;;  %818 = vmatpush3.bf16.msra.mxu1 %v910_v14  ;;  %v724_v9 = vld [vmem:[%s1293_s8] ss:$0 sm:$0xff] }
  0x70   :  { %799 = vmatprep.subr.bf16.mxu0 %v1060_v0  ;;  %819 = vmatprep.subr.bf16.mxu1 %v1060_v0 }
  0x73   :  { %800 = vmatpush3.bf16.msra.mxu0 %v902_v11  ;;  %820 = vmatpush3.bf16.msra.mxu1 %v911_v16 }
  0x74   :  { %801 = vmatprep.subr.bf16.mxu0 %v1060_v0  ;;  %821 = vmatprep.subr.bf16.mxu1 %v1060_v0 }
  0x77   :  { %802 = vmatpush3.bf16.msra.mxu0 %v903_v13  ;;  %822 = vmatpush3.bf16.msra.mxu1 %v912_v17 }
  0x78   :  { %827 = vmatprep.subr.bf16.mxu0 %v1060_v0  ;;  %847 = vmatprep.subr.bf16.mxu1 %v1060_v0 }
  0x7a   :  { %804 = vmatmul.mubr.bf16.vlgmr.msra.gmra.mrb[0].mxu0 %v904_v15 }
  0x7b   :  { %843 = vmatprep.mubr.msk.bf16.mxu0 %vm1061_vm0, %v1060_v0  ;;  %828 = vmatpush3.bf16.msra.mxu0 %v913_v18 }
  0x7c   :  { %829 = vmatprep.subr.bf16.mxu0 %v1060_v0 }
  0x7f   :  { %830 = vmatpush3.bf16.msra.mxu0 %v914_v19 }
  0x80   :  { %831 = vmatprep.subr.bf16.mxu0 %v1060_v0 }
  0x83   :  { %832 = vmatpush3.bf16.msra.mxu0 %v915_v20 }
  0x84   :  { %833 = vmatprep.subr.bf16.mxu0 %v1060_v0 }
  0x87   :  { %834 = vmatpush3.bf16.msra.mxu0 %v916_v21 }
  0x88   :  { %835 = vmatprep.subr.bf16.mxu0 %v1060_v0 }
  0x8b   :  { %836 = vmatpush3.bf16.msra.mxu0 %v917_v22 }
  0x8c   :  { %837 = vmatprep.subr.bf16.mxu0 %v1060_v0 }
  0x8f   :  { %838 = vmatpush3.bf16.msra.mxu0 %v918_v23 }
  0x90   :  { %839 = vmatprep.subr.bf16.mxu0 %v1060_v0 }
  0x93   :  { %840 = vmatpush3.bf16.msra.mxu0 %v919_v34 }
  0x94   :  { %841 = vmatprep.subr.bf16.mxu0 %v1060_v0 }
  0x97   :  { %842 = vmatpush3.bf16.msra.mxu0 %v920_v35 }
  0x98   :  { %867 = vmatprep.subr.bf16.mxu0 %v1060_v0 }
 0x14d   :  { %v220_v25 = vpop.f32.mrb[0].mxu0 }
 0x14e   :  { %v221_v26 = vadd.f32 %v696_v24, %v220_v25  ;;  %v805_v27 = vpop.f32.mrb[1].mxu0 }
 0x14f   :  { %v223_v28 = vpop.f32.mrb[2].mxu0 }
 0x150   :  { %v224_v29 = vadd.f32 %v696_v24, %v223_v28  ;;  %v806_v30 = vpop.f32.mrb[3].mxu0  ;;  %v227_v31 = vmax.f32 %v221_v26, 0.0 }
 0x152   :  { %v228_v32 = vmax.f32 %v224_v29, 0.0 }
 0x154   :  { %v229_v33 = vpack.c.bf16 %v228_v32, %v227_v31 }
 0x156   :  { %824 = vmatmul.mubr.bf16.vlgmr.msra.gmra.mrb[0].mxu1 %v229_v33 }
 0x157   :  { %863 = vmatprep.mubr.msk.bf16.mxu1 %vm1061_vm0, %v1060_v0  ;;  %848 = vmatpush3.bf16.msra.mxu1 %v921_v36 }
 0x158   :  { %849 = vmatprep.subr.bf16.mxu1 %v1060_v0 }
 0x15b   :  { %850 = vmatpush3.bf16.msra.mxu1 %v922_v37 }
 0x15c   :  { %851 = vmatprep.subr.bf16.mxu1 %v1060_v0 }
 0x15f   :  { %852 = vmatpush3.bf16.msra.mxu1 %v923_v38 }
 0x160   :  { %853 = vmatprep.subr.bf16.mxu1 %v1060_v0 }
 0x163   :  { %854 = vmatpush3.bf16.msra.mxu1 %v924_v39 }
 0x164   :  { %855 = vmatprep.subr.bf16.mxu1 %v1060_v0 }
 0x167   :  { %856 = vmatpush3.bf16.msra.mxu1 %v925_v40 }
 0x168   :  { %857 = vmatprep.subr.bf16.mxu1 %v1060_v0 }
 0x16b   :  { %858 = vmatpush3.bf16.msra.mxu1 %v926_v41 }
 0x16c   :  { %859 = vmatprep.subr.bf16.mxu1 %v1060_v0 }
 0x16f   :  { %860 = vmatpush3.bf16.msra.mxu1 %v927_v52 }
 0x170   :  { %861 = vmatprep.subr.bf16.mxu1 %v1060_v0 }
 0x173   :  { %862 = vmatpush3.bf16.msra.mxu1 %v928_v53 }
 0x229   :  { %v335_v43 = vpop.f32.mrb[0].mxu1 }
 0x22a   :  { %v336_v44 = vadd.f32 %v706_v42, %v335_v43  ;;  %v825_v45 = vpop.f32.mrb[1].mxu1 }
 0x22b   :  { %v338_v46 = vpop.f32.mrb[2].mxu1 }
 0x22c   :  { %v339_v47 = vadd.f32 %v706_v42, %v338_v46  ;;  %v826_v48 = vpop.f32.mrb[3].mxu1  ;;  %v342_v49 = vmax.f32 %v336_v44, 0.0 }
 0x22e   :  { %v343_v50 = vmax.f32 %v339_v47, 0.0 }
 0x230   :  { %v344_v51 = vpack.c.bf16 %v343_v50, %v342_v49 }
 0x232   :  { %844 = vmatmul.mubr.bf16.vlgmr.msra.gmra.mrb[4].mxu0 %v344_v51 }
 0x233   :  { %883 = vmatprep.mubr.msk.bf16.mxu0 %vm1061_vm0, %v1060_v0  ;;  %868 = vmatpush3.bf16.msra.mxu0 %v929_v54 }
 0x234   :  { %869 = vmatprep.subr.bf16.mxu0 %v1060_v0 }
 0x237   :  { %870 = vmatpush3.bf16.msra.mxu0 %v930_v55 }
 0x238   :  { %871 = vmatprep.subr.bf16.mxu0 %v1060_v0 }
 0x23b   :  { %872 = vmatpush3.bf16.msra.mxu0 %v931_v56 }
 0x23c   :  { %873 = vmatprep.subr.bf16.mxu0 %v1060_v0 }
 0x23f   :  { %874 = vmatpush3.bf16.msra.mxu0 %v932_v57 }
 0x240   :  { %875 = vmatprep.subr.bf16.mxu0 %v1060_v0 }
 0x243   :  { %876 = vmatpush3.bf16.msra.mxu0 %v933_v58 }
 0x244   :  { %877 = vmatprep.subr.bf16.mxu0 %v1060_v0 }
 0x247   :  { %878 = vmatpush3.bf16.msra.mxu0 %v934_v59 }
 0x248   :  { %879 = vmatprep.subr.bf16.mxu0 %v1060_v0 }
 0x24b   :  { %880 = vmatpush3.bf16.msra.mxu0 %v935_v7 }
 0x24c   :  { %881 = vmatprep.subr.bf16.mxu0 %v1060_v0  ;;  %v733_v0 = vld [vmem:[%s1295_s10] ss:$0 sm:$0xff] }
 0x24f   :  { %882 = vmatpush3.bf16.msra.mxu0 %v936_v8 }
 0x305   :  { %v450_v61 = vpop.f32.mrb[4].mxu0 }
 0x306   :  { %v451_v62 = vadd.f32 %v715_v60, %v450_v61  ;;  %v845_v63 = vpop.f32.mrb[5].mxu0 }
 0x307   :  { %v453_v1 = vpop.f32.mrb[6].mxu0 }
 0x308   :  { %v454_v2 = vadd.f32 %v715_v60, %v453_v1  ;;  %v846_v3 = vpop.f32.mrb[7].mxu0  ;;  %v457_v4 = vmax.f32 %v451_v62, 0.0 }
 0x30a   :  { %v458_v5 = vmax.f32 %v454_v2, 0.0 }
 0x30c   :  { %v459_v6 = vpack.c.bf16 %v458_v5, %v457_v4 }
 0x30e   :  { %864 = vmatmul.mubr.bf16.vlgmr.msra.gmra.mrb[4].mxu1 %v459_v6 }
 0x3e1   :  { %v565_v10 = vpop.f32.mrb[4].mxu1 }
 0x3e2   :  { %v566_v11 = vadd.f32 %v724_v9, %v565_v10  ;;  %v865_v12 = vpop.f32.mrb[5].mxu1 }
 0x3e3   :  { %v568_v13 = vpop.f32.mrb[6].mxu1 }
 0x3e4   :  { %v569_v14 = vadd.f32 %v724_v9, %v568_v13  ;;  %v866_v15 = vpop.f32.mrb[7].mxu1  ;;  %v572_v16 = vmax.f32 %v566_v11, 0.0 }
 0x3e6   :  { %v573_v17 = vmax.f32 %v569_v14, 0.0 }
 0x3e8   :  { %v574_v18 = vpack.c.bf16 %v573_v17, %v572_v16 }
 0x3ea   :  { %884 = vmatmul.mubr.bf16.vlgmr.msra.gmra.mrb[8].mxu0 %v574_v18 }
 0x4bd   :  { %v680_v19 = vpop.f32.mrb[8].mxu0 }
 0x4be   :  { %v681_v20 = vadd.f32 %v733_v0, %v680_v19  ;;  %v885_v21 = vpop.f32.mrb[9].mxu0 }
 0x4bf   :  { %v683_v22 = vpop.f32.mrb[10].mxu0 }
 0x4c0   :  { %687 = vst [vmem:[%s1296_s11] sm:$0xff] %v681_v20  ;;  %v684_v23 = vadd.f32 %v733_v0, %v683_v22  ;;  %v886_v24 = vpop.f32.mrb[11].mxu0 }
 0x4c2   :  { %688 = vst [vmem:[%s1296_s11 + $0x8] sm:$0xff] %v684_v23 }
 0x4c3   :  { %693 = vsyncpa [#allocation3], 1 }
 0x4c4   :  { %694 = vsyncpa [#allocation5], 1 }
 0x4c5   :  { %695 = vsyncpa [#allocation8], 1 }

</bundles_post_ra>
